<compile_context>
chip_gen: v6e
topology: v6e:2x2x1
jax: 0.10.0
libtpu: 0.0.40
codegen_flags: <defaults>
</compile_context>

<pallas_src>
import functools

import jax
import jax.numpy as jnp
from jax.experimental import pallas as pl
from jax.experimental.pallas import tpu as pltpu


def _round_up(x, m):
    return ((x + m - 1) // m) * m


# --------------------------- Pallas kernel --------------------------------- #

def _gcn_aggregate_kernel(kmap_ref, adj_ref, xw_ref, b_ref, *rest,
                          apply_relu, add_residual, tk, gk, xw_resident):
    """out[i] = sum_k A_hat[i,k] @ XW[k] + b   [+ReLU] [+residual]

    The f32 output block is resident across the k axis and doubles as the
    accumulator (no VMEM scratch).  Bias is folded into the k==0 init; ReLU /
    residual are fused into the k==last finalize.  All-zero adjacency tiles are
    skipped: their index_map repeats the previous block index (no DMA) and the
    MXU work is gated off with pl.when.
    """
    if add_residual:
        res_ref, o_ref = rest
    else:
        (o_ref,) = rest

    i = pl.program_id(0)
    k = pl.program_id(1)

    @pl.when(k == 0)
    def _():
        # bias folded into the accumulator init (padded bias columns are zero)
        o_ref[...] = jnp.broadcast_to(b_ref[...], o_ref.shape)

    # kmap[i*gk + k] == k  <=>  this (i, k) adjacency tile has at least one edge
    @pl.when(kmap_ref[i * gk + k] == k)
    def _():
        if xw_resident:
            start = pl.multiple_of(k * tk, tk)
            xw = xw_ref[pl.ds(start, tk), :]
        else:
            xw = xw_ref[...]
        o_ref[...] += jnp.dot(adj_ref[...], xw,
                              preferred_element_type=jnp.float32)

    if apply_relu or add_residual:
        @pl.when(k == pl.num_programs(1) - 1)
        def _():
            out = o_ref[...]
            if apply_relu:
                out = jnp.maximum(out, 0.0)
            if add_residual:
                out = out + res_ref[...]
            o_ref[...] = out


def _vmem_limit_bytes(n_pad, f_pad, tm, tk, xw_resident, add_residual):
    adj_b = 2 * tm * tk * 2                                  # double-buffered bf16
    xw_b = 2 * (n_pad if xw_resident else tk) * f_pad * 2
    out_b = 2 * tm * f_pad * 4
    res_b = 2 * tm * f_pad * 4 if add_residual else 0
    need = adj_b + xw_b + out_b + res_b + (1 << 20)
    # generous headroom, but stay well inside v7x's 64 MiB physical VMEM
    return int(min(max(32 << 20, (need * 5) // 4), 48 << 20))


def gcn_aggregate(adj, kmap, xw, b, residual=None, *, apply_relu, tm, tk):
    """out = adj @ xw + b (optional relu, optional + residual), tiled over (rows, k)."""
    n_pad, n_cols = adj.shape
    f_pad = xw.shape[1]
    assert n_pad % tm == 0 and n_cols % tk == 0 and f_pad % 128 == 0

    gi, gk = n_pad // tm, n_cols // tk
    add_residual = residual is not None
    # Keep the whole XW operand VMEM-resident when it fits (<= 8 MiB per buffer):
    # avoids re-streaming the XW k-slab once per row block.
    xw_resident = (n_cols * f_pad * 2) <= (8 << 20)

    kernel = functools.partial(
        _gcn_aggregate_kernel, apply_relu=apply_relu, add_residual=add_residual,
        tk=tk, gk=gk, xw_resident=xw_resident)

    if xw_resident:
        xw_spec = pl.BlockSpec((n_cols, f_pad), lambda i, k, km: (0, 0))
    else:
        xw_spec = pl.BlockSpec((tk, f_pad), lambda i, k, km: (k, 0))

    in_specs = [
        # empty tiles repeat the previous block index -> Pallas skips their DMA
        pl.BlockSpec((tm, tk), lambda i, k, km: (i, km[i * gk + k])),
        xw_spec,
        pl.BlockSpec((1, f_pad), lambda i, k, km: (0, 0)),   # bias stays resident
    ]
    operands = [adj, xw, b]
    if add_residual:
        in_specs.append(pl.BlockSpec((tm, f_pad), lambda i, k, km: (i, 0)))
        operands.append(residual)

    return pl.pallas_call(
        kernel,
        out_shape=jax.ShapeDtypeStruct((n_pad, f_pad), jnp.float32),
        grid_spec=pltpu.PrefetchScalarGridSpec(
            num_scalar_prefetch=1,
            grid=(gi, gk),                                   # reduction axis last
            in_specs=in_specs,
            out_specs=pl.BlockSpec((tm, f_pad), lambda i, k, km: (i, 0)),
        ),
        compiler_params=pltpu.CompilerParams(
            dimension_semantics=("parallel", "arbitrary"),
            vmem_limit_bytes=_vmem_limit_bytes(n_pad, f_pad, tm, tk,
                                               xw_resident, add_residual),
        ),
    )(kmap, *operands)


# ------------------------------ Glue (JAX) --------------------------------- #

def normalized_adjacency(edge_index, num_nodes, n_pad):
    """Dense GCN normalization D^-1/2 (A + I) D^-1/2, zero-padded, cast to bf16."""
    src = edge_index[0]
    dst = edge_index[1]
    loop = jnp.arange(num_nodes, dtype=edge_index.dtype)
    src = jnp.concatenate([src, loop])
    dst = jnp.concatenate([dst, loop])
    a = jnp.zeros((num_nodes, num_nodes), jnp.float32).at[dst, src].add(1.0)
    deg = a.sum(axis=1)
    dinv = jnp.where(deg > 0, jax.lax.rsqrt(deg), 0.0)
    a = dinv[:, None] * a * dinv[None, :]
    a = jnp.pad(a, ((0, n_pad - num_nodes), (0, n_pad - num_nodes)))
    # bf16 halves the dominant HBM traffic; MXU accumulates in f32 inside the kernel.
    # TODO(synk): on v7x an fp8 (e4m3) adjacency would halve this stream again.
    return a.astype(jnp.bfloat16)


def tile_kmap(adj, tm, tk):
    """Flattened (gi*gk,) int32 table for scalar prefetch.

    kmap[i*gk + k] = k if the (i,k) adjacency tile has any nonzero, else the last
    previous nonzero k (repeating the block index lets Pallas skip the DMA)."""
    gi, gk = adj.shape[0] // tm, adj.shape[1] // tk
    occ = (adj != 0).reshape(gi, tm, gk, tk).any(axis=(1, 3))
    kidx = jnp.arange(gk, dtype=jnp.int32)
    cand = jnp.where(occ, kidx[None, :], jnp.int32(-1))
    kmap = jnp.maximum(jax.lax.cummax(cand, axis=1), 0)
    return kmap.reshape(-1).astype(jnp.int32)


def _choose_tiles(n):
    """Pick (n_pad, tm, tk): big tiles amortize the ~0.35 us per-grid-step cost;
    tm/tk are decoupled (tk<=2048, tm<=1024) and tm keeps >= 2 row blocks when
    possible so both v7x TensorCores get work."""
    n128 = _round_up(max(n, 1), 128)
    tk = min(2048, n128)
    tm = min(1024, n128)
    n_pad = _round_up(n128, max(tm, tk))
    if n_pad // tm < 2 and n_pad >= 256:
        tm = n_pad // 2              # multiple of 64 -> satisfies the sublane rule
    return n_pad, tm, tk


def glorot(key, f_in, f_out):
    a = jnp.sqrt(6.0 / (f_in + f_out))
    return jax.random.uniform(key, (f_in, f_out), jnp.float32, -a, a)


def init_simple_gcn_res(key, num_features, num_classes, hidden_channels, num_layers):
    dims = [num_features] + [hidden_channels] * (num_layers - 1) + [num_classes]
    convs = []
    for i in range(num_layers):
        key, wk = jax.random.split(key)
        w = glorot(wk, dims[i], dims[i + 1])
        b = jnp.zeros((dims[i + 1],), jnp.float32)           # GCNConv bias init = zeros
        convs.append((w, b))
    proj = None
    if num_features != hidden_channels:                      # nn.Linear(num_features, hidden)
        key, wk, bk = jax.random.split(key, 3)
        bound = 1.0 / float(num_features) ** 0.5
        wp = jax.random.uniform(wk, (num_features, hidden_channels), jnp.float32,
                                -bound, bound)
        bp = jax.random.uniform(bk, (hidden_channels,), jnp.float32, -bound, bound)
        proj = (wp, bp)
    return {"convs": convs, "input_proj": proj}


def _pad_w_b(w, b, f_in_pad):
    """Pad layer weight/bias so padded feature columns stay exactly zero."""
    f_in, f_out = w.shape
    f_out_pad = _round_up(f_out, 128)                        # lane-dense output slab
    w = jnp.pad(w, ((0, f_in_pad - f_in), (0, f_out_pad - f_out)))
    b = jnp.pad(b, (0, f_out_pad - f_out)).reshape(1, f_out_pad)
    return w, b, f_out_pad


def simple_gcn_res_forward(params, x, edge_index):
    """Mirrors SimpleGCNRes.forward (dropout p=0.0 is an exact no-op)."""
    n, f_in = x.shape
    convs = params["convs"]
    proj = params["input_proj"]
    num_classes = convs[-1][0].shape[1]

    n_pad, tm, tk = _choose_tiles(n)
    # TODO(synk): for very large sparse graphs build A_hat tile-by-tile instead of
    # materializing the dense O(n^2) f32 intermediate below.
    adj = normalized_adjacency(edge_index, n, n_pad)         # (n_pad, n_pad) bf16
    kmap = tile_kmap(adj, tm, tk)                            # shared by every layer

    cur = jnp.pad(x, ((0, n_pad - n), (0, 0)))               # (n_pad, f_in) f32
    cur_fpad = f_in

    # ---- layer 0: h = relu(A_hat @ (X W0) + b0) + input_proj(X) ----
    w0, b0, fpad0 = _pad_w_b(*convs[0], cur_fpad)
    # Tiny X @ W matmul stays in plain JAX; heavy A_hat @ XW is the Pallas kernel.
    xw = jnp.dot(cur, w0, preferred_element_type=jnp.float32).astype(jnp.bfloat16)
    if proj is not None:
        wp, bp = proj
        wp = jnp.pad(wp, ((0, cur_fpad - wp.shape[0]), (0, fpad0 - wp.shape[1])))
        bp = jnp.pad(bp, (0, fpad0 - bp.shape[0]))
        identity = jnp.dot(cur, wp, preferred_element_type=jnp.float32) + bp[None, :]
    else:
        identity = jnp.pad(cur, ((0, 0), (0, fpad0 - cur_fpad)))
    cur = gcn_aggregate(adj, kmap, xw, b0, identity, apply_relu=True, tm=tm, tk=tk)
    cur_fpad = fpad0

    # ---- hidden layers: h = relu(A_hat @ (X W) + b) + x ----
    for w, b in convs[1:-1]:
        wpd, bpd, fpad = _pad_w_b(w, b, cur_fpad)
        xw = jnp.dot(cur, wpd, preferred_element_type=jnp.float32).astype(jnp.bfloat16)
        cur = gcn_aggregate(adj, kmap, xw, bpd, cur, apply_relu=True, tm=tm, tk=tk)
        cur_fpad = fpad

    # ---- last layer: out = A_hat @ (X W_L) + b_L  (no relu, no residual) ----
    wl, bl, _ = _pad_w_b(*convs[-1], cur_fpad)
    xw = jnp.dot(cur, wl, preferred_element_type=jnp.float32).astype(jnp.bfloat16)
    out = gcn_aggregate(adj, kmap, xw, bl, None, apply_relu=False, tm=tm, tk=tk)

    # TODO(synk): for medium graphs fuse all layers into one pallas_call with an
    # HBM/VMEM-resident A_hat (memory_space=pl.ANY + manual DMA) so A_hat is
    # streamed once instead of once per layer.
    return out[:n, :num_classes]


# --------------------- Pure-JAX f32 reference (for checking) --------------- #

def reference_forward(params, x, edge_index):
    n = x.shape[0]
    src, dst = edge_index[0], edge_index[1]
    loop = jnp.arange(n, dtype=edge_index.dtype)
    src = jnp.concatenate([src, loop])
    dst = jnp.concatenate([dst, loop])
    a = jnp.zeros((n, n), jnp.float32).at[dst, src].add(1.0)
    deg = a.sum(axis=1)
    dinv = jnp.where(deg > 0, jax.lax.rsqrt(deg), 0.0)
    a_hat = dinv[:, None] * a * dinv[None, :]

    convs = params["convs"]
    proj = params["input_proj"]

    def conv(h, w, b):
        return a_hat @ (h @ w) + b[None, :]

    h = jax.nn.relu(conv(x, *convs[0]))
    identity = x if proj is None else x @ proj[0] + proj[1][None, :]
    h = h + identity
    for w, b in convs[1:-1]:
        h = jax.nn.relu(conv(h, w, b)) + h
    return conv(h, *convs[-1])


# --------------------------------- Main ------------------------------------ #

if __name__ == "__main__":
    num_nodes = 16
    num_features = 8
    hidden_channels = 32
    num_classes = 4
    num_layers = 3

    key = jax.random.PRNGKey(0)
    key, xk, pk = jax.random.split(key, 3)

    x = jax.random.normal(xk, (num_nodes, num_features), jnp.float32)

    # Deterministic undirected ring graph (edges in both directions).
    i = jnp.arange(num_nodes, dtype=jnp.int32)
    j = (i + 1) % num_nodes
    edge_index = jnp.stack(
        [jnp.concatenate([i, j]), jnp.concatenate([j, i])], axis=0
    )  # (2, 2*num_nodes)

    params = init_simple_gcn_res(pk, num_features, num_classes, hidden_channels,
                                 num_layers)

    out = simple_gcn_res_forward(params, x, edge_index)
    out = jax.block_until_ready(out)
    assert out.shape == (num_nodes, num_classes)

    ref = jax.block_until_ready(reference_forward(params, x, edge_index))
    assert jnp.allclose(out, ref, rtol=5e-2, atol=5e-2), "mismatch vs f32 reference"

    print("KERNEL_OK")
</pallas_src>

<mosaic_0001>
module attributes {stable_mosaic.version = 11 : i64} {
  func.func @_gcn_aggregate_kernel(%arg0: i32, %arg1: i32, %arg2: memref<1xi32, #tpu.memory_space<smem>>, %arg3: memref<128x128xbf16, #tpu.memory_space<vmem>>, %arg4: memref<128x128xbf16, #tpu.memory_space<vmem>>, %arg5: memref<1x128xf32, #tpu.memory_space<vmem>>, %arg6: memref<128x128xf32, #tpu.memory_space<vmem>>, %arg7: memref<128x128xf32, #tpu.memory_space<vmem>>) attributes {dimension_semantics = [#tpu.dimension_semantics<parallel>, #tpu.dimension_semantics<arbitrary>], iteration_bounds = array<i64: 1, 1>, scalar_prefetch = 1 : i64, scratch_operands = 0 : i64, tpu.core_type = #tpu.core_type<tc>, window_params = [{transform_indices = @transform_0, window_bounds = array<i64: 128, 128>}, {pipeline_mode = #tpu.pipeline_mode<synchronous>, transform_indices = @transform_1, window_bounds = array<i64: 128, 128>}, {pipeline_mode = #tpu.pipeline_mode<synchronous>, transform_indices = @transform_2, window_bounds = array<i64: 1, 128>}, {transform_indices = @transform_3, window_bounds = array<i64: 128, 128>}, {transform_indices = @transform_4, window_bounds = array<i64: 128, 128>}]} {
    %c0_i32 = arith.constant 0 : i32
    %0 = arith.cmpi eq, %arg1, %c0_i32 : i32
    %1 = arith.extui %0 : i1 to i32
    %c0_i32_0 = arith.constant 0 : i32
    %2 = arith.cmpi ne, %1, %c0_i32_0 : i32
    scf.if %2 {
      %c0 = arith.constant 0 : index
      %c0_4 = arith.constant 0 : index
      %13 = vector.load %arg5[%c0, %c0_4] : memref<1x128xf32, #tpu.memory_space<vmem>>, vector<1x128xf32>
      %14 = vector.shape_cast %13 : vector<1x128xf32> to vector<1x128xf32>
      %15 = vector.broadcast %14 : vector<1x128xf32> to vector<128x128xf32>
      %c0_5 = arith.constant 0 : index
      %c0_6 = arith.constant 0 : index
      %16 = vector.load %arg7[%c0_5, %c0_6] : memref<128x128xf32, #tpu.memory_space<vmem>>, vector<128x128xf32>
      tpu.vector_store %arg7[%c0_5, %c0_6], %15 {strides = array<i32>} : memref<128x128xf32, #tpu.memory_space<vmem>>, vector<128x128xf32>,
    } else {
    }
    %c1_i32 = arith.constant 1 : i32
    %3 = arith.muli %arg0, %c1_i32 : i32
    %4 = arith.addi %3, %arg1 : i32
    %5 = arith.index_cast %4 : i32 to index
    %6 = memref.load %arg2[%5] : memref<1xi32, #tpu.memory_space<smem>>
    %7 = arith.cmpi eq, %6, %arg1 : i32
    %8 = arith.extui %7 : i1 to i32
    %c0_i32_1 = arith.constant 0 : i32
    %9 = arith.cmpi ne, %8, %c0_i32_1 : i32
    scf.if %9 {
      %c128_i32 = arith.constant 128 : i32
      %13 = arith.muli %arg1, %c128_i32 : i32
      %14 = tpu.assume_multiple %13, 128 : i32
      %15 = arith.index_cast %14 : i32 to index
      %c0 = arith.constant 0 : index
      %16 = vector.load %arg4[%15, %c0] : memref<128x128xbf16, #tpu.memory_space<vmem>>, vector<128x128xbf16>
      %c0_4 = arith.constant 0 : index
      %c0_5 = arith.constant 0 : index
      %17 = vector.load %arg7[%c0_4, %c0_5] : memref<128x128xf32, #tpu.memory_space<vmem>>, vector<128x128xf32>
      %c0_6 = arith.constant 0 : index
      %c0_7 = arith.constant 0 : index
      %18 = vector.load %arg3[%c0_6, %c0_7] : memref<128x128xbf16, #tpu.memory_space<vmem>>, vector<128x128xbf16>
      %cst = arith.constant dense<0.000000e+00> : vector<128x128xf32>
      %19 = tpu.matmul %18, %16, %cst {dimension_numbers = #tpu.dot_dimension_numbers<[1], [0], [0], [1], [0, 0, 1, 1], [], []>} : vector<128x128xbf16>, vector<128x128xbf16>, vector<128x128xf32> -> vector<128x128xf32>
      %20 = arith.addf %17, %19 : vector<128x128xf32>
      %c0_8 = arith.constant 0 : index
      %c0_9 = arith.constant 0 : index
      %21 = vector.load %arg7[%c0_8, %c0_9] : memref<128x128xf32, #tpu.memory_space<vmem>>, vector<128x128xf32>
      tpu.vector_store %arg7[%c0_8, %c0_9], %20 {strides = array<i32>} : memref<128x128xf32, #tpu.memory_space<vmem>>, vector<128x128xf32>,
    } else {
    }
    %c0_i32_2 = arith.constant 0 : i32
    %10 = arith.cmpi eq, %arg1, %c0_i32_2 : i32
    %11 = arith.extui %10 : i1 to i32
    %c0_i32_3 = arith.constant 0 : i32
    %12 = arith.cmpi ne, %11, %c0_i32_3 : i32
    scf.if %12 {
      %c0 = arith.constant 0 : index
      %c0_4 = arith.constant 0 : index
      %13 = vector.load %arg7[%c0, %c0_4] : memref<128x128xf32, #tpu.memory_space<vmem>>, vector<128x128xf32>
      %cst = arith.constant 0.000000e+00 : f32
      %14 = vector.broadcast %cst : f32 to vector<128x128xf32>
      %15 = arith.maximumf %13, %14 : vector<128x128xf32>
      %c0_5 = arith.constant 0 : index
      %c0_6 = arith.constant 0 : index
      %16 = vector.load %arg6[%c0_5, %c0_6] : memref<128x128xf32, #tpu.memory_space<vmem>>, vector<128x128xf32>
      %17 = arith.addf %15, %16 : vector<128x128xf32>
      %c0_7 = arith.constant 0 : index
      %c0_8 = arith.constant 0 : index
      %18 = vector.load %arg7[%c0_7, %c0_8] : memref<128x128xf32, #tpu.memory_space<vmem>>, vector<128x128xf32>
      tpu.vector_store %arg7[%c0_7, %c0_8], %17 {strides = array<i32>} : memref<128x128xf32, #tpu.memory_space<vmem>>, vector<128x128xf32>,
    } else {
    }
    return
  }
  func.func @transform_0(%arg0: i32, %arg1: i32, %arg2: memref<1xi32, #tpu.memory_space<smem>>) -> (i32, i32) {
    %c1_i32 = arith.constant 1 : i32
    %0 = arith.muli %arg0, %c1_i32 : i32
    %1 = arith.addi %0, %arg1 : i32
    %2 = arith.index_cast %1 : i32 to index
    %3 = memref.load %arg2[%2] : memref<1xi32, #tpu.memory_space<smem>>
    %c0_i32 = arith.constant 0 : i32
    return %arg0, %3 : i32, i32
  }
  func.func @transform_1(%arg0: i32, %arg1: i32, %arg2: memref<1xi32, #tpu.memory_space<smem>>) -> (i32, i32) {
    %c0_i32 = arith.constant 0 : i32
    %c0_i32_0 = arith.constant 0 : i32
    %c0_i32_1 = arith.constant 0 : i32
    return %c0_i32, %c0_i32_0 : i32, i32
  }
  func.func @transform_2(%arg0: i32, %arg1: i32, %arg2: memref<1xi32, #tpu.memory_space<smem>>) -> (i32, i32) {
    %c0_i32 = arith.constant 0 : i32
    %c0_i32_0 = arith.constant 0 : i32
    %c0_i32_1 = arith.constant 0 : i32
    return %c0_i32, %c0_i32_0 : i32, i32
  }
  func.func @transform_3(%arg0: i32, %arg1: i32, %arg2: memref<1xi32, #tpu.memory_space<smem>>) -> (i32, i32) {
    %c0_i32 = arith.constant 0 : i32
    %c0_i32_0 = arith.constant 0 : i32
    return %arg0, %c0_i32 : i32, i32
  }
  func.func @transform_4(%arg0: i32, %arg1: i32, %arg2: memref<1xi32, #tpu.memory_space<smem>>) -> (i32, i32) {
    %c0_i32 = arith.constant 0 : i32
    %c0_i32_0 = arith.constant 0 : i32
    return %arg0, %c0_i32 : i32, i32
  }
}

</mosaic_0001>

<bundles_post_ra>
// kernel: tpu_custom_call.1
= control target key start
LH: loop header
LB: loop body
LE: loop exit
PB: predicated region body
PF: predicated region fallthrough
CT: control target
= control target key end

     0   :  { %11 = vsyncpa [#allocation5], 0  ;;  %s756_s0 = inlined_call_operand.<no memory space> [shape: s32[1], index: 0, kind: input, shape index: {}]   ;;  %s757_s1 = inlined_call_operand.hbm [shape: bf16[128,128], index: 1, kind: input, shape index: {}]   ;;  %s758_s2 = inlined_call_operand.hbm [shape: bf16[128,128], index: 2, kind: input, shape index: {}]   ;;  %s759_s3 = inlined_call_operand.vmem [shape: f32[1,128], index: 3, kind: input, shape index: {}]   ;;  %s760_s4 = inlined_call_operand.hbm [shape: f32[128,128], index: 4, kind: input, shape index: {}]   ;;  %s761_s5 = inlined_call_operand.hbm [shape: f32[128,128], index: 5, kind: output, shape index: {}]  }
   0x1   :  { %12 = vsyncpa [#allocation8], 0 }
   0x2   :  { %13 = vsyncpa [#allocation6], 0  ;;  %s484_s20 = sshll.u32 %s756_s0, 6  ;;  %s679_s21 = smov [#allocation7]  }
   0x3   :  { %s35_s22 = sshll.u32 %s679_s21, 4  ;;  %s723_s25 = scalar_lea.hbm %s757_s1, %s484_s20  ;;  %s36_s22 = int_to_ptr.vmem [resolvable:$true] %s35_s22 }
   0x4   :  { %s599_s26 = scalar_lea.vmem %s36_s22, 1024  ;;  %p604_p1 = scmp.lt.s32.totalorder %s36_s22, %s36_s22 }
   0x5   :  { %p600_p0 = scmp.ne.s32.totalorder %s36_s22, %s599_s26  ;;  %p605_p2 = scmp.lt.s32.totalorder %s599_s26, %s599_s26 }
   0x7   :  { %p606_p3 = por %p605_p2, %p604_p1 }
   0x9   :  { %p607_p4 = pnand %p606_p3, %p600_p0 }
   0xb   :  { %610 = shalt.err (!%p607_p4)
}
   0xc   :  { %s680_s27 = smov 64   ;;  %s681_s28 = smov 4  }
   0xd   :  { %41 = dma.hbm_to_vmem [thread:$0]  %s758_s2, 1024, %s36_s22, [#allocation8], %s680_s27, %s680_s27, %s681_s28  }
   0xe   :  { %s682_s6 = smov [#allocation4]   ;;  %s683_s8 = smov [#allocation9]  }
   0xf   :  { %s23_s7 = sshll.u32 %s682_s6, 4  ;;  %s49_s9 = sshll.u32 %s683_s8, 4  ;;  %s24_s7 = int_to_ptr.vmem [resolvable:$true] %s23_s7  ;;  %s50_s9 = int_to_ptr.vmem [resolvable:$true] %s49_s9 }
  0x10   :  { %s611_s10 = scalar_lea.hbm %s723_s25, 1024  ;;  %s613_s13 = scalar_lea.hbm %s757_s1, 1024 }
  0x11   :  { %p612_p5 = scmp.ne.s32.totalorder %s723_s25, %s611_s10  ;;  %p614_p6 = scmp.lt.s32.totalorder %s723_s25, %s757_s1 }
  0x12   :  { %p615_p7 = scmp.lt.s32.totalorder %s613_s13, %s611_s10 }
  0x14   :  { %p616_p8 = por %p615_p7, %p614_p6 }
  0x16   :  { %p617_p9 = pnand %p616_p8, %p612_p5 }
  0x18   :  { %620 = shalt.err (!%p617_p9)
}
  0x19   :  { %s621_s2 = scalar_lea.vmem %s24_s7, 1024  ;;  %p626_p11 = scmp.lt.s32.totalorder %s24_s7, %s24_s7 }
  0x1a   :  { %p622_p10 = scmp.ne.s32.totalorder %s24_s7, %s621_s2  ;;  %p627_p12 = scmp.lt.s32.totalorder %s621_s2, %s621_s2 }
  0x1c   :  { %p628_p13 = por %p627_p12, %p626_p11 }
  0x1e   :  { %p629_p0 = pnand %p628_p13, %p622_p10 }
  0x20   :  { %632 = shalt.err (!%p629_p0)
}
  0x21   :  { %29 = dma.hbm_to_vmem [thread:$0]  %s723_s25, 1024, %s24_s7, [#allocation5], %s680_s27, %s680_s27, %s681_s28  }
  0x22   :  { %s641_s16 = scalar_lea.vmem %s50_s9, 2048  ;;  %p646_p2 = scmp.lt.s32.totalorder %s50_s9, %s50_s9 }
  0x23   :  { %p642_p1 = scmp.ne.s32.totalorder %s50_s9, %s641_s16  ;;  %p647_p3 = scmp.lt.s32.totalorder %s641_s16, %s641_s16 }
  0x25   :  { %p648_p4 = por %p647_p3, %p646_p2 }
  0x27   :  { %p649_p6 = pnand %p648_p4, %p642_p1 }
  0x29   :  { %652 = shalt.err (!%p649_p6)
}
  0x2a   :  { %s684_s1 = smov 128   ;;  %s685_s17 = smov 8  }
  0x2b   :  { %55 = dma.hbm_to_vmem [thread:$0]  %s760_s4, 2048, %s50_s9, [#allocation8], %s684_s1, %s684_s1, %s685_s17  }
  0x2c   :  { %673 = dma.done.wait [#allocation5], 1024  }
  0x2d   :  { %674 = vsyncadd [#allocation5], 4294966272 }
  0x2e   :  { %675 = dma.done.wait [#allocation8], 3072  }
  0x2f   :  { %676 = vsyncadd [#allocation8], 4294964224  ;;  %v485_v0 = vld [vmem:[%s759_s3] ss:$0 sm:$0xff]  ;;  %p486_p5 = scmp.ne.s32.totalorder %s756_s0, 0 }
  0x30   :  { %79 = vst [vmem:[#allocation10] sm:$0xff] %v485_v0  ;;  %80 = vst [vmem:[#allocation10 + $0x8] sm:$0xff] %v485_v0 }
  0x31   :  { %81 = vst [vmem:[#allocation10 + $0x10] sm:$0xff] %v485_v0  ;;  %82 = vst [vmem:[#allocation10 + $0x18] sm:$0xff] %v485_v0 }
  0x32   :  { %83 = vst [vmem:[#allocation10 + $0x20] sm:$0xff] %v485_v0  ;;  %84 = vst [vmem:[#allocation10 + $0x28] sm:$0xff] %v485_v0 }
  0x33   :  { %85 = vst [vmem:[#allocation10 + $0x30] sm:$0xff] %v485_v0  ;;  %86 = vst [vmem:[#allocation10 + $0x38] sm:$0xff] %v485_v0  ;;  %100 = sbr.rel (%p486_p5) target bundleno = 299 (0x12b), region = 37 }
  0x34   :  { %87 = vst [vmem:[#allocation10 + $0x40] sm:$0xff] %v485_v0  ;;  %88 = vst [vmem:[#allocation10 + $0x48] sm:$0xff] %v485_v0 }
  0x35   :  { %89 = vst [vmem:[#allocation10 + $0x50] sm:$0xff] %v485_v0  ;;  %90 = vst [vmem:[#allocation10 + $0x58] sm:$0xff] %v485_v0 }
  0x36   :  { %91 = vst [vmem:[#allocation10 + $0x60] sm:$0xff] %v485_v0  ;;  %92 = vst [vmem:[#allocation10 + $0x68] sm:$0xff] %v485_v0 }
  0x37   :  { %93 = vst [vmem:[#allocation10 + $0x70] sm:$0xff] %v485_v0  ;;  %94 = vst [vmem:[#allocation10 + $0x78] sm:$0xff] %v485_v0 }
  0x38   :  { %v575_v1 = vld [vmem:[#allocation7 + $0x38] sm:$0xff]   ;;  %v576_v2 = vld [vmem:[#allocation7 + $0x30] sm:$0xff]   ;;  %v577_v3 = vld [vmem:[#allocation7 + $0x28] sm:$0xff]  }
  0x39   :  { %519 = vmatprep.subr.bf16.mxu0 %v575_v1  ;;  %551 = vmatprep.subr.bf16.mxu1 %v575_v1  ;;  %v578_v4 = vld [vmem:[#allocation7 + $0x20] sm:$0xff]   ;;  %v579_v7 = vld [vmem:[#allocation7 + $0x18] sm:$0xff]   ;;  %v580_v8 = vld [vmem:[#allocation7 + $0x10] sm:$0xff]  }
  0x3a   :  { %520 = vmatpush3.bf16.msra.mxu0 %v575_v1  ;;  %559 = vmatpush3.bf16.msra.mxu1 %v575_v1  ;;  %v583_v5 = vld [vmem:[#allocation4] sm:$0xff]   ;;  %v581_v9 = vld [vmem:[#allocation7 + $0x8] sm:$0xff]   ;;  %v587_v13 = vld [vmem:[#allocation4 + $0x10] sm:$0xff]  }
  0x3b   :  { %521 = vmatprep.subr.bf16.mxu0 %v576_v2  ;;  %552 = vmatprep.subr.bf16.mxu1 %v576_v2  ;;  %v584_v6 = vld [vmem:[#allocation4 + $0x20] sm:$0xff]   ;;  %v585_v11 = vld [vmem:[#allocation4 + $0x8] sm:$0xff]   ;;  %v588_v14 = vld [vmem:[#allocation4 + $0x30] sm:$0xff]  }
  0x3c   :  { %535 = vmatprep.mubr.bf16.mxu0 %v583_v5  ;;  %543 = vmatprep.mubr.bf16.mxu1 %v584_v6  ;;  %v582_v10 = vld [vmem:[#allocation7] sm:$0xff]   ;;  %v586_v12 = vld [vmem:[#allocation4 + $0x28] sm:$0xff]   ;;  %v589_v15 = vld [vmem:[#allocation4 + $0x18] sm:$0xff]  }
  0x3d   :  { %v590_v16 = vld [vmem:[#allocation4 + $0x38] sm:$0xff]   ;;  %v124_v17 = vld [vmem:[#allocation10 + $0x10] sm:$0xff]  ;;  %v122_v21 = vld [vmem:[#allocation10] sm:$0xff] }
  0x3e   :  { %522 = vmatpush3.bf16.msra.mxu0 %v576_v2  ;;  %560 = vmatpush3.bf16.msra.mxu1 %v576_v2  ;;  %v132_v18 = vld [vmem:[#allocation10 + $0x50] sm:$0xff]  ;;  %v130_v22 = vld [vmem:[#allocation10 + $0x40] sm:$0xff]  ;;  %v125_v27 = vld [vmem:[#allocation10 + $0x18] sm:$0xff] }
  0x3f   :  { %523 = vmatprep.subr.bf16.mxu0 %v577_v3  ;;  %553 = vmatprep.subr.bf16.mxu1 %v577_v3  ;;  %v133_v28 = vld [vmem:[#allocation10 + $0x58] sm:$0xff]  ;;  %v123_v33 = vld [vmem:[#allocation10 + $0x8] sm:$0xff]  ;;  %v128_v39 = vld [vmem:[#allocation10 + $0x30] sm:$0xff] }
  0x40   :  { %v131_v34 = vld [vmem:[#allocation10 + $0x48] sm:$0xff]  ;;  %v136_v40 = vld [vmem:[#allocation10 + $0x70] sm:$0xff]  ;;  %v126_v45 = vld [vmem:[#allocation10 + $0x20] sm:$0xff] }
  0x41   :  { %v134_v46 = vld [vmem:[#allocation10 + $0x60] sm:$0xff]  ;;  %v129_v51 = vld [vmem:[#allocation10 + $0x38] sm:$0xff]  ;;  %v127_v57 = vld [vmem:[#allocation10 + $0x28] sm:$0xff] }
  0x42   :  { %524 = vmatpush3.bf16.msra.mxu0 %v577_v3  ;;  %561 = vmatpush3.bf16.msra.mxu1 %v577_v3  ;;  %v137_v52 = vld [vmem:[#allocation10 + $0x78] sm:$0xff]  ;;  %v135_v58 = vld [vmem:[#allocation10 + $0x68] sm:$0xff] }
  0x43   :  { %525 = vmatprep.subr.bf16.mxu0 %v578_v4  ;;  %554 = vmatprep.subr.bf16.mxu1 %v578_v4 }
  0x46   :  { %526 = vmatpush3.bf16.msra.mxu0 %v578_v4  ;;  %562 = vmatpush3.bf16.msra.mxu1 %v578_v4 }
  0x47   :  { %527 = vmatprep.subr.bf16.mxu0 %v579_v7  ;;  %555 = vmatprep.subr.bf16.mxu1 %v579_v7 }
  0x4a   :  { %528 = vmatpush3.bf16.msra.mxu0 %v579_v7  ;;  %563 = vmatpush3.bf16.msra.mxu1 %v579_v7 }
  0x4b   :  { %529 = vmatprep.subr.bf16.mxu0 %v580_v8  ;;  %556 = vmatprep.subr.bf16.mxu1 %v580_v8 }
  0x4e   :  { %530 = vmatpush3.bf16.msra.mxu0 %v580_v8  ;;  %564 = vmatpush3.bf16.msra.mxu1 %v580_v8 }
  0x4f   :  { %531 = vmatprep.subr.bf16.mxu0 %v581_v9  ;;  %557 = vmatprep.subr.bf16.mxu1 %v581_v9 }
  0x52   :  { %532 = vmatpush3.bf16.msra.mxu0 %v581_v9  ;;  %565 = vmatpush3.bf16.msra.mxu1 %v581_v9 }
  0x53   :  { %533 = vmatprep.subr.bf16.mxu0 %v582_v10  ;;  %558 = vmatprep.subr.bf16.mxu1 %v582_v10 }
  0x56   :  { %534 = vmatpush3.bf16.msra.mxu0 %v582_v10  ;;  %566 = vmatpush3.bf16.msra.mxu1 %v582_v10 }
  0x59   :  { %536 = vmatmul.mubr.bf16.vlgmr.msra.gmra.mxu0 %v585_v11  ;;  %544 = vmatmul.mubr.bf16.vlgmr.msra.gmra.mxu1 %v586_v12 }
  0x5a   :  { %539 = vmatprep.mubr.bf16.mxu0 %v587_v13  ;;  %547 = vmatprep.mubr.bf16.mxu1 %v588_v14 }
  0x61   :  { %540 = vmatmul.mubr.bf16.gmra.mxu0 %v589_v15  ;;  %548 = vmatmul.mubr.bf16.gmra.mxu1 %v590_v16 }
 0x119   :  { %v537_v19 = vpop.f32.mrf.mxu0  ;;  %v545_v20 = vpop.f32.mrf.mxu1 }
 0x11a   :  { %v349_v23 = vadd.f32 %v537_v19, %v124_v17  ;;  %v357_v24 = vadd.f32 %v545_v20, %v132_v18 }
 0x11b   :  { %v284_v25 = vpop.f32.mrf.mxu0  ;;  %v316_v26 = vpop.f32.mrf.mxu1 }
 0x11c   :  { %365 = vst [vmem:[#allocation10 + $0x10] sm:$0xff] %v349_v23  ;;  %373 = vst [vmem:[#allocation10 + $0x50] sm:$0xff] %v357_v24  ;;  %v347_v29 = vadd.f32 %v284_v25, %v122_v21  ;;  %v355_v30 = vadd.f32 %v316_v26, %v130_v22 }
 0x11d   :  { %v538_v31 = vpop.f32.mrf.mxu0  ;;  %v546_v32 = vpop.f32.mrf.mxu1 }
 0x11e   :  { %363 = vst [vmem:[#allocation10] sm:$0xff] %v347_v29  ;;  %371 = vst [vmem:[#allocation10 + $0x40] sm:$0xff] %v355_v30  ;;  %v350_v35 = vadd.f32 %v538_v31, %v125_v27  ;;  %v358_v36 = vadd.f32 %v546_v32, %v133_v28 }
 0x11f   :  { %v287_v37 = vpop.f32.mrf.mxu0  ;;  %v319_v38 = vpop.f32.mrf.mxu1 }
 0x120   :  { %366 = vst [vmem:[#allocation10 + $0x18] sm:$0xff] %v350_v35  ;;  %374 = vst [vmem:[#allocation10 + $0x58] sm:$0xff] %v358_v36  ;;  %v348_v41 = vadd.f32 %v287_v37, %v123_v33  ;;  %v356_v42 = vadd.f32 %v319_v38, %v131_v34 }
 0x121   :  { %v541_v43 = vpop.f32.mrf.mxu0  ;;  %v549_v44 = vpop.f32.mrf.mxu1 }
 0x122   :  { %364 = vst [vmem:[#allocation10 + $0x8] sm:$0xff] %v348_v41  ;;  %372 = vst [vmem:[#allocation10 + $0x48] sm:$0xff] %v356_v42  ;;  %v353_v47 = vadd.f32 %v541_v43, %v128_v39  ;;  %v361_v48 = vadd.f32 %v549_v44, %v136_v40 }
 0x123   :  { %v300_v49 = vpop.f32.mrf.mxu0  ;;  %v332_v50 = vpop.f32.mrf.mxu1 }
 0x124   :  { %369 = vst [vmem:[#allocation10 + $0x30] sm:$0xff] %v353_v47  ;;  %377 = vst [vmem:[#allocation10 + $0x70] sm:$0xff] %v361_v48  ;;  %v351_v53 = vadd.f32 %v300_v49, %v126_v45  ;;  %v359_v54 = vadd.f32 %v332_v50, %v134_v46 }
 0x125   :  { %v542_v55 = vpop.f32.mrf.mxu0  ;;  %v550_v56 = vpop.f32.mrf.mxu1 }
 0x126   :  { %367 = vst [vmem:[#allocation10 + $0x20] sm:$0xff] %v351_v53  ;;  %375 = vst [vmem:[#allocation10 + $0x60] sm:$0xff] %v359_v54  ;;  %v354_v59 = vadd.f32 %v542_v55, %v129_v51  ;;  %v362_v60 = vadd.f32 %v550_v56, %v137_v52 }
 0x127   :  { %v303_v61 = vpop.f32.mrf.mxu0  ;;  %v335_v62 = vpop.f32.mrf.mxu1 }
 0x128   :  { %370 = vst [vmem:[#allocation10 + $0x38] sm:$0xff] %v354_v59  ;;  %378 = vst [vmem:[#allocation10 + $0x78] sm:$0xff] %v362_v60  ;;  %v352_v63 = vadd.f32 %v303_v61, %v127_v57  ;;  %v360_v0 = vadd.f32 %v335_v62, %v135_v58 }
 0x12a   :  { %368 = vst [vmem:[#allocation10 + $0x28] sm:$0xff] %v352_v63  ;;  %376 = vst [vmem:[#allocation10 + $0x68] sm:$0xff] %v360_v0 }
 0x12b PF:  { %v382_v1 = vld [vmem:[#allocation10] sm:$0xff]  ;;  %v383_v3 = vld [vmem:[#allocation10 + $0x8] sm:$0xff]  ;;  %v384_v7 = vld [vmem:[#allocation10 + $0x10] sm:$0xff]  ;;  %s686_s0 = smov [#allocation10]  }
 0x12c   :  { %v414_v2 = vld [vmem:[#allocation9] sm:$0xff]  ;;  %v398_v4 = vmax.f32 %v382_v1, 0.0  ;;  %v399_v5 = vmax.f32 %v383_v3, 0.0  ;;  %v415_v6 = vld [vmem:[#allocation9 + $0x8] sm:$0xff]  ;;  %v416_v8 = vld [vmem:[#allocation9 + $0x10] sm:$0xff]  ;;  %v400_v9 = vmax.f32 %v384_v7, 0.0 }
 0x12d   :  { %v385_v10 = vld [vmem:[#allocation10 + $0x18] sm:$0xff]  ;;  %v386_v12 = vld [vmem:[#allocation10 + $0x20] sm:$0xff]  ;;  %v419_v19 = vld [vmem:[#allocation9 + $0x28] sm:$0xff]  ;;  %s467_s3 = sshll.u32 %s686_s0, 4  ;;  %s468_s3 = int_to_ptr.vmem [resolvable:$true] %s467_s3 }
 0x12e   :  { %v417_v11 = vld [vmem:[#allocation9 + $0x18] sm:$0xff]  ;;  %v430_v13 = vadd.f32 %v414_v2, %v398_v4  ;;  %v431_v14 = vadd.f32 %v415_v6, %v399_v5  ;;  %v401_v15 = vmax.f32 %v385_v10, 0.0  ;;  %v402_v16 = vmax.f32 %v386_v12, 0.0  ;;  %v418_v17 = vld [vmem:[#allocation9 + $0x20] sm:$0xff]  ;;  %v388_v22 = vld [vmem:[#allocation10 + $0x30] sm:$0xff]  ;;  %s653_s23 = scalar_lea.vmem %s468_s3, 2048  ;;  %p658_p8 = scmp.lt.s32.totalorder %s468_s3, %s468_s3 }
 0x12f   :  { %v432_v20 = vadd.f32 %v416_v8, %v400_v9  ;;  %v420_v23 = vld [vmem:[#allocation9 + $0x30] sm:$0xff]  ;;  %v389_v24 = vld [vmem:[#allocation10 + $0x38] sm:$0xff]  ;;  %v404_v27 = vmax.f32 %v388_v22, 0.0  ;;  %v390_v30 = vld [vmem:[#allocation10 + $0x40] sm:$0xff]  ;;  %p654_p7 = scmp.ne.s32.totalorder %s468_s3, %s653_s23  ;;  %p659_p9 = scmp.lt.s32.totalorder %s653_s23, %s653_s23 }
 0x130   :  { %446 = vst [vmem:[#allocation10] sm:$0xff] %v430_v13  ;;  %447 = vst [vmem:[#allocation10 + $0x8] sm:$0xff] %v431_v14  ;;  %v433_v25 = vadd.f32 %v417_v11, %v401_v15  ;;  %v434_v26 = vadd.f32 %v418_v17, %v402_v16  ;;  %v405_v28 = vmax.f32 %v389_v24, 0.0  ;;  %v421_v29 = vld [vmem:[#allocation9 + $0x38] sm:$0xff]  ;;  %v422_v31 = vld [vmem:[#allocation9 + $0x40] sm:$0xff]  ;;  %v406_v33 = vmax.f32 %v390_v30, 0.0 }
 0x131   :  { %v387_v18 = vld [vmem:[#allocation10 + $0x28] sm:$0xff]  ;;  %448 = vst [vmem:[#allocation10 + $0x10] sm:$0xff] %v432_v20  ;;  %v392_v36 = vld [vmem:[#allocation10 + $0x50] sm:$0xff]  ;;  %v436_v37 = vadd.f32 %v420_v23, %v404_v27  ;;  %v393_v42 = vld [vmem:[#allocation10 + $0x58] sm:$0xff]  ;;  %p660_p10 = por %p659_p9, %p658_p8 }
 0x132   :  { %v403_v21 = vmax.f32 %v387_v18, 0.0  ;;  %v391_v34 = vld [vmem:[#allocation10 + $0x48] sm:$0xff]  ;;  %449 = vst [vmem:[#allocation10 + $0x18] sm:$0xff] %v433_v25  ;;  %450 = vst [vmem:[#allocation10 + $0x20] sm:$0xff] %v434_v26  ;;  %v437_v38 = vadd.f32 %v421_v29, %v405_v28  ;;  %v408_v40 = vmax.f32 %v392_v36, 0.0  ;;  %v424_v41 = vld [vmem:[#allocation9 + $0x50] sm:$0xff]  ;;  %v438_v44 = vadd.f32 %v422_v31, %v406_v33 }
 0x133   :  { %v423_v35 = vld [vmem:[#allocation9 + $0x48] sm:$0xff]  ;;  %v407_v39 = vmax.f32 %v391_v34, 0.0  ;;  %v425_v43 = vld [vmem:[#allocation9 + $0x58] sm:$0xff]  ;;  %v409_v45 = vmax.f32 %v393_v42, 0.0  ;;  %v394_v46 = vld [vmem:[#allocation10 + $0x60] sm:$0xff]  ;;  %452 = vst [vmem:[#allocation10 + $0x30] sm:$0xff] %v436_v37  ;;  %p661_p11 = pnand %p660_p10, %p654_p7 }
 0x134   :  { %v435_v32 = vadd.f32 %v419_v19, %v403_v21  ;;  %v426_v47 = vld [vmem:[#allocation9 + $0x60] sm:$0xff]  ;;  %v395_v48 = vld [vmem:[#allocation10 + $0x68] sm:$0xff]  ;;  %453 = vst [vmem:[#allocation10 + $0x38] sm:$0xff] %v437_v38  ;;  %v440_v50 = vadd.f32 %v424_v41, %v408_v40  ;;  %v410_v51 = vmax.f32 %v394_v46, 0.0  ;;  %v396_v54 = vld [vmem:[#allocation10 + $0x70] sm:$0xff] }
 0x135   :  { %v439_v49 = vadd.f32 %v423_v35, %v407_v39  ;;  %v411_v52 = vmax.f32 %v395_v48, 0.0  ;;  %v427_v53 = vld [vmem:[#allocation9 + $0x68] sm:$0xff]  ;;  %v428_v55 = vld [vmem:[#allocation9 + $0x70] sm:$0xff]  ;;  %454 = vst [vmem:[#allocation10 + $0x40] sm:$0xff] %v438_v44  ;;  %v441_v56 = vadd.f32 %v425_v43, %v409_v45  ;;  %v412_v57 = vmax.f32 %v396_v54, 0.0  ;;  %v397_v58 = vld [vmem:[#allocation10 + $0x78] sm:$0xff] }
 0x136   :  { %451 = vst [vmem:[#allocation10 + $0x28] sm:$0xff] %v435_v32  ;;  %v429_v59 = vld [vmem:[#allocation9 + $0x78] sm:$0xff]  ;;  %456 = vst [vmem:[#allocation10 + $0x50] sm:$0xff] %v440_v50  ;;  %v442_v60 = vadd.f32 %v426_v47, %v410_v51  ;;  %v413_v62 = vmax.f32 %v397_v58, 0.0 }
 0x137   :  { %455 = vst [vmem:[#allocation10 + $0x48] sm:$0xff] %v439_v49  ;;  %v443_v61 = vadd.f32 %v427_v53, %v411_v52  ;;  %457 = vst [vmem:[#allocation10 + $0x58] sm:$0xff] %v441_v56  ;;  %v444_v63 = vadd.f32 %v428_v55, %v412_v57 }
 0x138   :  { %458 = vst [vmem:[#allocation10 + $0x60] sm:$0xff] %v442_v60  ;;  %v445_v0 = vadd.f32 %v429_v59, %v413_v62 }
 0x139   :  { %459 = vst [vmem:[#allocation10 + $0x68] sm:$0xff] %v443_v61  ;;  %460 = vst [vmem:[#allocation10 + $0x70] sm:$0xff] %v444_v63 }
 0x13a   :  { %461 = vst [vmem:[#allocation10 + $0x78] sm:$0xff] %v445_v0 }
 0x13b   :  { %664 = shalt.err (!%p661_p11)
}
 0x13c   :  { %473 = dma.vmem_to_hbm [thread:$0]  %s468_s3, 2048, %s761_s5, [#allocation6], %s684_s1, %s684_s1, %s685_s17  }
 0x13d   :  { %677 = dma.done.wait [#allocation6], 2048  }
 0x13e   :  { %678 = vsyncadd [#allocation6], 4294965248 }
 0x13f   :  { %477 = vsyncpa [#allocation5], 1 }
 0x140   :  { %478 = vsyncpa [#allocation8], 1 }
 0x141   :  { %479 = vsyncpa [#allocation6], 1 }

</bundles_post_ra>
